<compile_context>
chip_gen: v5e
topology: v5e:2x2
jax: 0.10.0
libtpu: 0.0.40
codegen_flags: <defaults>
</compile_context>

<pallas_src>
import jax
import jax.numpy as jnp
from jax.experimental import pallas as pl
from jax.experimental.pallas import tpu as pltpu

INPUT_SIZE = 10
NUM_CLASSES = 5
DROPOUT_P = 0.5
BATCH_TILE = 128  # lane-width tile over the batch axis


def mynet_kernel(xT_ref, maskT_ref, w_ref, b_ref, outT_ref):
    # --- dropout (training mode); 1/(1-p) scale is pre-folded into w_ref ---
    dropped = xT_ref[...] * maskT_ref[...]                       # [10, TB]
    # TODO(synk): the PyTorch forward print()s the full dropout tensor;
    # pl.debug_print only handles scalars, so the tensor print is omitted.

    # --- fc1: out^T = W @ dropped + b (batch on the lane axis) ---
    outT_ref[...] = (
        jnp.dot(w_ref[...], dropped, preferred_element_type=jnp.float32)
        + b_ref[...]                                             # [5,1] bcast over lanes
    )


def _compiler_params():
    # Prefer the current name; fall back gracefully on older JAX versions.
    if hasattr(pltpu, "CompilerParams"):
        return pltpu.CompilerParams(dimension_semantics=("parallel",))
    if hasattr(pltpu, "TPUCompilerParams"):
        return pltpu.TPUCompilerParams(dimension_semantics=("parallel",))
    return None


def mynet_forward(x, w, b, key, *, p=DROPOUT_P, training=True, tb=BATCH_TILE):
    """Forward pass of MyNet.

    x: [B, input_size] (or [input_size]) f32
    w: [num_classes, input_size] f32   (PyTorch Linear layout)
    b: [num_classes] f32
    key: jax.random key for the dropout mask (fresh key per call, like PyTorch RNG)
    """
    x = jnp.atleast_2d(x).astype(jnp.float32)
    B = x.shape[0]
    keep_prob = 1.0 - p

    if training:
        mask = jax.random.bernoulli(key, keep_prob, (B, INPUT_SIZE)).astype(jnp.float32)
        w_eff = (w * jnp.float32(1.0 / keep_prob)).astype(jnp.float32)  # fold dropout scale
    else:
        mask = jnp.ones((B, INPUT_SIZE), jnp.float32)
        w_eff = w.astype(jnp.float32)

    # Lane-dense layout: put batch on the lane (last) axis.
    x_t = x.T                                   # [10, B]
    mask_t = mask.T                             # [10, B]
    b_col = b.reshape(NUM_CLASSES, 1).astype(jnp.float32)

    # Pad batch up to a multiple of the lane tile.
    n_blocks = pl.cdiv(B, tb)
    B_pad = n_blocks * tb
    if B_pad != B:
        pad = B_pad - B
        x_t = jnp.pad(x_t, ((0, 0), (0, pad)))
        mask_t = jnp.pad(mask_t, ((0, 0), (0, pad)))

    out_t = pl.pallas_call(
        mynet_kernel,
        out_shape=jax.ShapeDtypeStruct((NUM_CLASSES, B_pad), jnp.float32),
        grid=(n_blocks,),
        in_specs=[
            pl.BlockSpec((INPUT_SIZE, tb), lambda i: (0, i)),           # x^T tile
            pl.BlockSpec((INPUT_SIZE, tb), lambda i: (0, i)),           # mask^T tile
            pl.BlockSpec((NUM_CLASSES, INPUT_SIZE), lambda i: (0, 0)),  # W (resident)
            pl.BlockSpec((NUM_CLASSES, 1), lambda i: (0, 0)),           # bias column
        ],
        out_specs=pl.BlockSpec((NUM_CLASSES, tb), lambda i: (0, i)),    # out^T tile
        compiler_params=_compiler_params(),
    )(x_t, mask_t, w_eff, b_col)

    return out_t[:, :B].T                        # [B, num_classes]


if __name__ == "__main__":
    key = jax.random.PRNGKey(0)
    k_w, k_b, k_drop = jax.random.split(key, 3)

    # PyTorch Linear default init: U(-1/sqrt(fan_in), 1/sqrt(fan_in))
    bound = 1.0 / (INPUT_SIZE ** 0.5)
    w = jax.random.uniform(k_w, (NUM_CLASSES, INPUT_SIZE), jnp.float32, -bound, bound)
    b = jax.random.uniform(k_b, (NUM_CLASSES,), jnp.float32, -bound, bound)

    # Input matching the script: x = arange(0, 10).float(), with a batch dim of 2.
    B = 2
    x = jnp.tile(jnp.arange(INPUT_SIZE, dtype=jnp.float32)[None, :], (B, 1))

    out = mynet_forward(x, w, b, k_drop)
    out = jax.block_until_ready(out)
    assert out.shape == (B, NUM_CLASSES) and out.dtype == jnp.float32

    # Pure-JAX reference with the identical dropout mask.
    keep = jax.random.bernoulli(k_drop, 1.0 - DROPOUT_P, (B, INPUT_SIZE)).astype(jnp.float32)
    ref = (x * keep / (1.0 - DROPOUT_P)) @ w.T + b
    assert jnp.allclose(out, ref, rtol=1e-4, atol=1e-4)

    print("KERNEL_OK")
</pallas_src>

<mosaic_0001>
module attributes {stable_mosaic.version = 11 : i64} {
  func.func @mynet_kernel(%arg0: i32, %arg1: memref<10x128xf32, #tpu.memory_space<vmem>>, %arg2: memref<10x128xf32, #tpu.memory_space<vmem>>, %arg3: memref<5x10xf32, #tpu.memory_space<vmem>>, %arg4: memref<5x1xf32, #tpu.memory_space<vmem>>, %arg5: memref<5x128xf32, #tpu.memory_space<vmem>>) attributes {dimension_semantics = [#tpu.dimension_semantics<parallel>], iteration_bounds = array<i64: 1>, scalar_prefetch = 0 : i64, scratch_operands = 0 : i64, tpu.core_type = #tpu.core_type<tc>, window_params = [{transform_indices = @transform_0, window_bounds = array<i64: 10, 128>}, {transform_indices = @transform_1, window_bounds = array<i64: 10, 128>}, {pipeline_mode = #tpu.pipeline_mode<synchronous>, transform_indices = @transform_2, window_bounds = array<i64: 5, 10>}, {pipeline_mode = #tpu.pipeline_mode<synchronous>, transform_indices = @transform_3, window_bounds = array<i64: 5, 1>}, {transform_indices = @transform_4, window_bounds = array<i64: 5, 128>}]} {
    %c0 = arith.constant 0 : index
    %c0_0 = arith.constant 0 : index
    %0 = vector.load %arg1[%c0, %c0_0] : memref<10x128xf32, #tpu.memory_space<vmem>>, vector<10x128xf32>
    %c0_1 = arith.constant 0 : index
    %c0_2 = arith.constant 0 : index
    %1 = vector.load %arg2[%c0_1, %c0_2] : memref<10x128xf32, #tpu.memory_space<vmem>>, vector<10x128xf32>
    %2 = arith.mulf %0, %1 : vector<10x128xf32>
    %c0_3 = arith.constant 0 : index
    %c0_4 = arith.constant 0 : index
    %3 = vector.load %arg3[%c0_3, %c0_4] : memref<5x10xf32, #tpu.memory_space<vmem>>, vector<5x10xf32>
    %cst = arith.constant dense<0.000000e+00> : vector<5x128xf32>
    %4 = tpu.matmul %3, %2, %cst {dimension_numbers = #tpu.dot_dimension_numbers<[1], [0], [0], [1], [0, 0, 1, 1], [], []>} : vector<5x10xf32>, vector<10x128xf32>, vector<5x128xf32> -> vector<5x128xf32>
    %c0_5 = arith.constant 0 : index
    %c0_6 = arith.constant 0 : index
    %5 = vector.load %arg4[%c0_5, %c0_6] : memref<5x1xf32, #tpu.memory_space<vmem>>, vector<5x1xf32>
    %6 = vector.broadcast %5 : vector<5x1xf32> to vector<5x128xf32>
    %7 = arith.addf %4, %6 : vector<5x128xf32>
    %c0_7 = arith.constant 0 : index
    %c0_8 = arith.constant 0 : index
    %8 = vector.load %arg5[%c0_7, %c0_8] : memref<5x128xf32, #tpu.memory_space<vmem>>, vector<5x128xf32>
    tpu.vector_store %arg5[%c0_7, %c0_8], %7 {strides = array<i32>} : memref<5x128xf32, #tpu.memory_space<vmem>>, vector<5x128xf32>,
    return
  }
  func.func @transform_0(%arg0: i32) -> (i32, i32) {
    %c0_i32 = arith.constant 0 : i32
    %c0_i32_0 = arith.constant 0 : i32
    return %c0_i32, %arg0 : i32, i32
  }
  func.func @transform_1(%arg0: i32) -> (i32, i32) {
    %c0_i32 = arith.constant 0 : i32
    %c0_i32_0 = arith.constant 0 : i32
    return %c0_i32, %arg0 : i32, i32
  }
  func.func @transform_2(%arg0: i32) -> (i32, i32) {
    %c0_i32 = arith.constant 0 : i32
    %c0_i32_0 = arith.constant 0 : i32
    %c0_i32_1 = arith.constant 0 : i32
    return %c0_i32, %c0_i32_0 : i32, i32
  }
  func.func @transform_3(%arg0: i32) -> (i32, i32) {
    %c0_i32 = arith.constant 0 : i32
    %c0_i32_0 = arith.constant 0 : i32
    %c0_i32_1 = arith.constant 0 : i32
    return %c0_i32, %c0_i32_0 : i32, i32
  }
  func.func @transform_4(%arg0: i32) -> (i32, i32) {
    %c0_i32 = arith.constant 0 : i32
    %c0_i32_0 = arith.constant 0 : i32
    return %c0_i32, %arg0 : i32, i32
  }
}

</mosaic_0001>

<bundles_post_ra>
// kernel: tpu_custom_call.1
= control target key start
LH: loop header
LB: loop body
LE: loop exit
PB: predicated region body
PF: predicated region fallthrough
CT: control target
= control target key end

     0   :  { %9 = vsyncpa [#allocation3], 0  ;;  %s243_s0 = inlined_call_operand.hbm [shape: f32[10,128], index: 0, kind: input, shape index: {}]   ;;  %s244_s1 = inlined_call_operand.hbm [shape: f32[10,128], index: 1, kind: input, shape index: {}]   ;;  %s245_s2 = inlined_call_operand.vmem [shape: f32[5,10], index: 2, kind: input, shape index: {}]   ;;  %s246_s3 = inlined_call_operand.vmem [shape: f32[5,1], index: 3, kind: input, shape index: {}]   ;;  %s247_s4 = inlined_call_operand.hbm [shape: f32[5,128], index: 4, kind: output, shape index: {}]  }
   0x1   :  { %10 = vsyncpa [#allocation6], 0 }
   0x2   :  { %11 = vsyncpa [#allocation4], 0  ;;  %s16_s17 = sshll.u32 %s243_s0, 4  ;;  %s197_s18 = smov [#allocation2]   ;;  %s17_s17 = int_to_ptr.hbm [resolvable:$true] %s16_s17 }
   0x3   :  { %s18_s19 = sshll.u32 %s197_s18, 4  ;;  %s29_s22 = sshll.u32 %s244_s1, 4  ;;  %s19_s19 = int_to_ptr.vmem [resolvable:$true] %s18_s19  ;;  %s30_s22 = int_to_ptr.hbm [resolvable:$true] %s29_s22 }
   0x4   :  { %s198_s23 = smov 128   ;;  %s199_s24 = smov 8  }
   0x5   :  { %24 = dma.hbm_to_vmem [thread:$0]  %s17_s17, 256, %s19_s19, [#allocation3], %s198_s23, %s198_s23, %s199_s24  }
   0x6   :  { %s200_s25 = smov [#allocation5]  }
   0x7   :  { %s31_s26 = sshll.u32 %s200_s25, 4  ;;  %s32_s26 = int_to_ptr.vmem [resolvable:$true] %s31_s26 }
   0x8   :  { %37 = dma.hbm_to_vmem [thread:$0]  %s30_s22, 256, %s32_s26, [#allocation6], %s198_s23, %s198_s23, %s199_s24  }
   0x9   :  { %191 = dma.done.wait [#allocation3], 256  }
   0xa   :  { %192 = vsyncadd [#allocation3], 4294967040 }
   0xb   :  { %193 = dma.done.wait [#allocation6], 256  }
   0xc   :  { %194 = vsyncadd [#allocation6], 4294967040  ;;  %v201_v0 = vmov 0   ;;  %v51_v1 = vld [vmem:[#allocation2 + $0x8] sm:$0x3]  ;;  %vm67_vm0 = vcmask 1041408  }
   0xd   :  { %118 = vset.pattern.permute.xlu0 %v201_v0  ;;  %v53_v2 = vld [vmem:[#allocation5 + $0x8] sm:$0x3]  ;;  %v50_v3 = vld [vmem:[#allocation2] sm:$0xff]  ;;  %v52_v5 = vld [vmem:[#allocation5] sm:$0xff]  ;;  %vm63_vm1 = vcmask 80896   ;;  %s202_s29 = smov [#allocation7]  }
   0xe   :  { %v55_v4 = vmul.f32 %v53_v2, %v51_v1  ;;  %v57_v6 = vld [vmem:[%s246_s3] sm:$0x1f]  ;;  %v54_v7 = vmul.f32 %v52_v5, %v50_v3  ;;  %s97_s30 = sshll.u32 %s202_s29, 4  ;;  %s99_s7 = sshll.u32 %s247_s4, 4  ;;  %s98_s30 = int_to_ptr.vmem [resolvable:$true] %s97_s30  ;;  %s100_s7 = int_to_ptr.hbm [resolvable:$true] %s99_s7 }
   0xf   :  { %60 = vperm.xlu0 %118, %v57_v6   ;;  %v56_v8 = vld [vmem:[%s245_s2] sm:$0x1f] }
  0x10   :  { %110 = vmatpush.msk.msra.mxu0 %vm67_vm0, %v55_v4 }
  0x12   :  { %86 = vmatpush.msra.mxu0 %v54_v7 }
  0x13   :  { %111 = vmatmul.msk.f32.vlgmr.msra.gmra.mxu0 %vm63_vm1, %v56_v8 }
  0x81   :  { %v61_v9 = vpop.permute.xlu0 %60 }
  0x90   :  { %v88_v10 = vpop.f32.mrf.mxu0 }
  0x91   :  { %v89_v11 = vadd.f32 %v88_v10, %v61_v9 }
  0x93   :  { %91 = vst [vmem:[#allocation7] sm:$0x1f] %v89_v11 }
  0x94   :  { %102 = dma.vmem_to_hbm [thread:$0]  %s98_s30, 128, %s100_s7, [#allocation4]  }
  0x95   :  { %195 = dma.done.wait [#allocation4], 128  }
  0x96   :  { %196 = vsyncadd [#allocation4], 4294967168 }
  0x97   :  { %107 = vsyncpa [#allocation3], 1 }
  0x98   :  { %108 = vsyncpa [#allocation6], 1 }
  0x99   :  { %109 = vsyncpa [#allocation4], 1 }

</bundles_post_ra>
